<compile_context>
chip_gen: v6e
topology: v6e:2x2x1
jax: 0.10.0
libtpu: 0.0.40
codegen_flags: <defaults>
</compile_context>

<pallas_src>
import jax
import jax.numpy as jnp
from jax.experimental import pallas as pl
from jax.experimental.pallas import tpu as pltpu


def _fused_conv1x1_kernel(x_ref, w_ref, b_ref, o_ref):
    # x_ref: (2*Cin, HWp)  stacked [x1; x2] pixels, lane-dense.
    # w_ref: (2*Cout, 2*Cin) combined weights (elementwise combine folded in).
    # b_ref: (2*Cout, 1)   combined biases.
    # o_ref: (2*Cout, HWp) stacked [v4; v5] interior pixels.
    x = x_ref[...]
    w = w_ref[...]
    cin2 = x.shape[0]

    # Tiny contraction on the VPU: (2*Cout,1) * (1,HWp) broadcast multiply-adds.
    # Seed with bias + k=0 term (no zeros-init pass, no separate bias-add pass).
    acc = b_ref[...] + w[:, 0:1] * x[0:1, :]
    for k in range(1, cin2):
        acc = acc + w[:, k:k + 1] * x[k:k + 1, :]
    o_ref[...] = acc


def fused_model_forward(x1, x2, w1, b1, w2, b2):
    """Equivalent of Model.forward: two Conv2d(3, 8, 1, stride=1, padding=1),
    v4 = 2*conv1(x1) + conv2(x2), v5 = conv1(x1) + 2*conv2(x2)."""
    n, cin, h, w = x1.shape
    cout = w1.shape[0]
    pad = 1
    hp, wp = h + 2 * pad, w + 2 * pad
    hw = h * w

    # --- stacked, lane-dense input: (N, 2*Cin, H*W), contiguous reshape only ---
    x = jnp.concatenate([x1, x2], axis=1).reshape(n, 2 * cin, hw)
    x = x.astype(jnp.float32)

    # Pad lane axis up to a 128-multiple (no-op for H*W = 1024).
    hwp = ((hw + 127) // 128) * 128
    if hwp != hw:
        x = jnp.pad(x, ((0, 0), (0, 0), (0, hwp - hw)))

    # --- combined weights / biases (fold the v4/v5 combine into the matmul) ---
    w1m = w1.reshape(cout, cin).astype(jnp.float32)
    w2m = w2.reshape(cout, cin).astype(jnp.float32)
    wc = jnp.concatenate(
        [jnp.concatenate([2.0 * w1m, w2m], axis=1),      # rows 0..Cout-1  -> v4
         jnp.concatenate([w1m, 2.0 * w2m], axis=1)],     # rows Cout..2C-1 -> v5
        axis=0)                                           # (2*Cout, 2*Cin)
    bc = jnp.concatenate([2.0 * b1 + b2, b1 + 2.0 * b2]).astype(jnp.float32)
    bc_col = bc.reshape(2 * cout, 1)

    out = pl.pallas_call(
        _fused_conv1x1_kernel,
        out_shape=jax.ShapeDtypeStruct((n, 2 * cout, hwp), jnp.float32),
        grid=(n,),
        in_specs=[
            pl.BlockSpec((pl.Squeezed(), 2 * cin, hwp), lambda i: (i, 0, 0)),
            pl.BlockSpec((2 * cout, 2 * cin), lambda i: (0, 0)),
            pl.BlockSpec((2 * cout, 1), lambda i: (0, 0)),
        ],
        out_specs=pl.BlockSpec((pl.Squeezed(), 2 * cout, hwp),
                               lambda i: (i, 0, 0)),
        compiler_params=pltpu.CompilerParams(
            dimension_semantics=("parallel",)),
    )(x, wc, bc_col)

    # --- single fused epilogue: border of padded output is pure combined bias ---
    inner = out[:, :, :hw].reshape(n, 2, cout, h, w)
    full = jnp.broadcast_to(bc.reshape(1, 2, cout, 1, 1),
                            (n, 2, cout, hp, wp))
    full = jax.lax.dynamic_update_slice(full, inner, (0, 0, 0, pad, pad))
    return full[:, 0], full[:, 1]


if __name__ == "__main__":
    key = jax.random.PRNGKey(0)
    k_x1, k_x2, k_w1, k_b1, k_w2, k_b2 = jax.random.split(key, 6)

    # Shapes matching the module: N=1, Cin=3, spatial=32x32, Cout=8.
    N, CIN, H, W = 1, 3, 32, 32
    COUT = 8

    x1 = jax.random.normal(k_x1, (N, CIN, H, W), dtype=jnp.float32)
    x2 = jax.random.normal(k_x2, (N, CIN, H, W), dtype=jnp.float32)

    # Conv2d(3, 8, 1) weight: (8, 3, 1, 1), bias: (8,)
    w1 = jax.random.normal(k_w1, (COUT, CIN, 1, 1), dtype=jnp.float32) * 0.1
    b1 = jax.random.normal(k_b1, (COUT,), dtype=jnp.float32) * 0.1
    w2 = jax.random.normal(k_w2, (COUT, CIN, 1, 1), dtype=jnp.float32) * 0.1
    b2 = jax.random.normal(k_b2, (COUT,), dtype=jnp.float32) * 0.1

    v4, v5 = jax.jit(fused_model_forward)(x1, x2, w1, b1, w2, b2)
    jax.block_until_ready((v4, v5))

    # Pure-JAX reference (1x1 conv with zero padding=1).
    def ref_conv(x, w, b):
        xp = jnp.pad(x, ((0, 0), (0, 0), (1, 1), (1, 1)))
        return (jnp.einsum('nchw,oc->nohw', xp, w.reshape(COUT, CIN))
                + b[None, :, None, None])

    r1 = ref_conv(x1, w1, b1)
    r2 = ref_conv(x2, w2, b2)
    ref_v4 = 2.0 * r1 + r2
    ref_v5 = r1 + 2.0 * r2

    assert v4.shape == (N, COUT, H + 2, W + 2)
    assert v5.shape == (N, COUT, H + 2, W + 2)
    assert jnp.allclose(v4, ref_v4, atol=1e-4, rtol=1e-4)
    assert jnp.allclose(v5, ref_v5, atol=1e-4, rtol=1e-4)

    print("KERNEL_OK")
</pallas_src>

<mosaic_0001>
module attributes {stable_mosaic.version = 11 : i64} {
  func.func @_fused_conv1x1_kernel(%arg0: i32, %arg1: memref<1x6x1024xf32, #tpu.memory_space<vmem>>, %arg2: memref<16x6xf32, #tpu.memory_space<vmem>>, %arg3: memref<16x1xf32, #tpu.memory_space<vmem>>, %arg4: memref<1x16x1024xf32, #tpu.memory_space<vmem>>) attributes {dimension_semantics = [#tpu.dimension_semantics<parallel>], iteration_bounds = array<i64: 1>, scalar_prefetch = 0 : i64, scratch_operands = 0 : i64, tpu.core_type = #tpu.core_type<tc>, window_params = [{transform_indices = @transform_0, window_bounds = array<i64: 1, 6, 1024>}, {pipeline_mode = #tpu.pipeline_mode<synchronous>, transform_indices = @transform_1, window_bounds = array<i64: 16, 6>}, {pipeline_mode = #tpu.pipeline_mode<synchronous>, transform_indices = @transform_2, window_bounds = array<i64: 16, 1>}, {transform_indices = @transform_3, window_bounds = array<i64: 1, 16, 1024>}]} {
    %c0 = arith.constant 0 : index
    %c0_0 = arith.constant 0 : index
    %c0_1 = arith.constant 0 : index
    %0 = vector.load %arg1[%c0, %c0_0, %c0_1] : memref<1x6x1024xf32, #tpu.memory_space<vmem>>, vector<1x6x1024xf32>
    %1 = vector.shape_cast %0 : vector<1x6x1024xf32> to vector<6x1024xf32>
    %c0_2 = arith.constant 0 : index
    %c0_3 = arith.constant 0 : index
    %2 = vector.load %arg2[%c0_2, %c0_3] : memref<16x6xf32, #tpu.memory_space<vmem>>, vector<16x6xf32>
    %c0_4 = arith.constant 0 : index
    %c0_5 = arith.constant 0 : index
    %3 = vector.load %arg3[%c0_4, %c0_5] : memref<16x1xf32, #tpu.memory_space<vmem>>, vector<16x1xf32>
    %4 = vector.extract_strided_slice %2 {offsets = [0, 0], sizes = [16, 1], strides = [1, 1]} : vector<16x6xf32> to vector<16x1xf32>
    %5 = vector.extract_strided_slice %1 {offsets = [0, 0], sizes = [1, 1024], strides = [1, 1]} : vector<6x1024xf32> to vector<1x1024xf32>
    %6 = vector.broadcast %4 : vector<16x1xf32> to vector<16x1024xf32>
    %7 = vector.broadcast %5 : vector<1x1024xf32> to vector<16x1024xf32>
    %8 = arith.mulf %6, %7 : vector<16x1024xf32>
    %9 = vector.broadcast %3 : vector<16x1xf32> to vector<16x1024xf32>
    %10 = arith.addf %9, %8 : vector<16x1024xf32>
    %11 = vector.extract_strided_slice %2 {offsets = [0, 1], sizes = [16, 1], strides = [1, 1]} : vector<16x6xf32> to vector<16x1xf32>
    %12 = vector.extract_strided_slice %1 {offsets = [1, 0], sizes = [1, 1024], strides = [1, 1]} : vector<6x1024xf32> to vector<1x1024xf32>
    %13 = vector.broadcast %11 : vector<16x1xf32> to vector<16x1024xf32>
    %14 = vector.broadcast %12 : vector<1x1024xf32> to vector<16x1024xf32>
    %15 = arith.mulf %13, %14 : vector<16x1024xf32>
    %16 = arith.addf %10, %15 : vector<16x1024xf32>
    %17 = vector.extract_strided_slice %2 {offsets = [0, 2], sizes = [16, 1], strides = [1, 1]} : vector<16x6xf32> to vector<16x1xf32>
    %18 = vector.extract_strided_slice %1 {offsets = [2, 0], sizes = [1, 1024], strides = [1, 1]} : vector<6x1024xf32> to vector<1x1024xf32>
    %19 = vector.broadcast %17 : vector<16x1xf32> to vector<16x1024xf32>
    %20 = vector.broadcast %18 : vector<1x1024xf32> to vector<16x1024xf32>
    %21 = arith.mulf %19, %20 : vector<16x1024xf32>
    %22 = arith.addf %16, %21 : vector<16x1024xf32>
    %23 = vector.extract_strided_slice %2 {offsets = [0, 3], sizes = [16, 1], strides = [1, 1]} : vector<16x6xf32> to vector<16x1xf32>
    %24 = vector.extract_strided_slice %1 {offsets = [3, 0], sizes = [1, 1024], strides = [1, 1]} : vector<6x1024xf32> to vector<1x1024xf32>
    %25 = vector.broadcast %23 : vector<16x1xf32> to vector<16x1024xf32>
    %26 = vector.broadcast %24 : vector<1x1024xf32> to vector<16x1024xf32>
    %27 = arith.mulf %25, %26 : vector<16x1024xf32>
    %28 = arith.addf %22, %27 : vector<16x1024xf32>
    %29 = vector.extract_strided_slice %2 {offsets = [0, 4], sizes = [16, 1], strides = [1, 1]} : vector<16x6xf32> to vector<16x1xf32>
    %30 = vector.extract_strided_slice %1 {offsets = [4, 0], sizes = [1, 1024], strides = [1, 1]} : vector<6x1024xf32> to vector<1x1024xf32>
    %31 = vector.broadcast %29 : vector<16x1xf32> to vector<16x1024xf32>
    %32 = vector.broadcast %30 : vector<1x1024xf32> to vector<16x1024xf32>
    %33 = arith.mulf %31, %32 : vector<16x1024xf32>
    %34 = arith.addf %28, %33 : vector<16x1024xf32>
    %35 = vector.extract_strided_slice %2 {offsets = [0, 5], sizes = [16, 1], strides = [1, 1]} : vector<16x6xf32> to vector<16x1xf32>
    %36 = vector.extract_strided_slice %1 {offsets = [5, 0], sizes = [1, 1024], strides = [1, 1]} : vector<6x1024xf32> to vector<1x1024xf32>
    %37 = vector.broadcast %35 : vector<16x1xf32> to vector<16x1024xf32>
    %38 = vector.broadcast %36 : vector<1x1024xf32> to vector<16x1024xf32>
    %39 = arith.mulf %37, %38 : vector<16x1024xf32>
    %40 = arith.addf %34, %39 : vector<16x1024xf32>
    %c0_6 = arith.constant 0 : index
    %c0_7 = arith.constant 0 : index
    %c0_8 = arith.constant 0 : index
    %41 = vector.load %arg4[%c0_6, %c0_7, %c0_8] : memref<1x16x1024xf32, #tpu.memory_space<vmem>>, vector<1x16x1024xf32>
    %42 = vector.shape_cast %41 : vector<1x16x1024xf32> to vector<16x1024xf32>
    %43 = vector.shape_cast %40 : vector<16x1024xf32> to vector<1x16x1024xf32>
    tpu.vector_store %arg4[%c0_6, %c0_7, %c0_8], %43 {strides = array<i32>} : memref<1x16x1024xf32, #tpu.memory_space<vmem>>, vector<1x16x1024xf32>,
    return
  }
  func.func @transform_0(%arg0: i32) -> (i32, i32, i32) {
    %c0_i32 = arith.constant 0 : i32
    %c0_i32_0 = arith.constant 0 : i32
    %c0_i32_1 = arith.constant 0 : i32
    return %arg0, %c0_i32, %c0_i32_0 : i32, i32, i32
  }
  func.func @transform_1(%arg0: i32) -> (i32, i32) {
    %c0_i32 = arith.constant 0 : i32
    %c0_i32_0 = arith.constant 0 : i32
    %c0_i32_1 = arith.constant 0 : i32
    return %c0_i32, %c0_i32_0 : i32, i32
  }
  func.func @transform_2(%arg0: i32) -> (i32, i32) {
    %c0_i32 = arith.constant 0 : i32
    %c0_i32_0 = arith.constant 0 : i32
    %c0_i32_1 = arith.constant 0 : i32
    return %c0_i32, %c0_i32_0 : i32, i32
  }
  func.func @transform_3(%arg0: i32) -> (i32, i32, i32) {
    %c0_i32 = arith.constant 0 : i32
    %c0_i32_0 = arith.constant 0 : i32
    %c0_i32_1 = arith.constant 0 : i32
    return %arg0, %c0_i32, %c0_i32_0 : i32, i32, i32
  }
}

</mosaic_0001>

<bundles_post_ra>
// kernel: fused_model_forward.1
= control target key start
LH: loop header
LB: loop body
LE: loop exit
PB: predicated region body
PF: predicated region fallthrough
CT: control target
= control target key end

     0   :  { %v507_v0 = vmov 0   ;;  %v508_v5 = vmov 1   ;;  %v509_v6 = vmov 2   ;;  %v510_v7 = vmov 3   ;;  %s881_s2 = inlined_call_operand.vmem [shape: f32[16,1], index: 2, kind: input, shape index: {}]   ;;  %s882_s1 = inlined_call_operand.vmem [shape: f32[16,6], index: 1, kind: input, shape index: {}]   ;;  %s883_s0 = inlined_call_operand.vmem [shape: f32[1,6,1024], index: 0, kind: input, shape index: {}]   ;;  %s884_s3 = inlined_call_operand.vmem [shape: f32[1,16,1024], index: 3, kind: output, shape index: {}]  }
   0x1   :  { %497 = vset.pattern.permute.xlu1 %v507_v0  ;;  %496 = vset.pattern.permute.xlu0 %v507_v0  ;;  %v24_v1 = vld [vmem:[%s881_s2] sm:$0xff]  ;;  %v25_v3 = vld [vmem:[%s881_s2 + $0x8] sm:$0xff]  ;;  %v511_v8 = vmov 4   ;;  %v512_v9 = vmov 5   ;;  %v36_v10 = vlaneseq  ;;  %v16_v15 = vld [vmem:[%s883_s0 + $0x10] sm:$0x3f] }
   0x2   :  { %v22_v2 = vld [vmem:[%s882_s1] sm:$0xff]  ;;  %86 = vperm.xlu1 %497, %v24_v1   ;;  %v23_v4 = vld [vmem:[%s882_s1 + $0x8] sm:$0xff]  ;;  %v17_v16 = vld [vmem:[%s883_s0 + $0x18] sm:$0x3f] }
   0x3   :  { %28 = vperm.xlu0 %496, %v22_v2   ;;  %v37_v11 = vshrl.u32 %v36_v10, 7  ;;  %v14_v13 = vld [vmem:[%s883_s0] sm:$0x3f]  ;;  %v15_v14 = vld [vmem:[%s883_s0 + $0x8] sm:$0x3f] }
   0x4   :  { %v18_v17 = vld [vmem:[%s883_s0 + $0x20] sm:$0x3f]  ;;  %v19_v18 = vld [vmem:[%s883_s0 + $0x28] sm:$0x3f]  ;;  %v20_v19 = vld [vmem:[%s883_s0 + $0x30] sm:$0x3f] }
   0x5   :  { %v38_v12 = vsub.s32 0, %v37_v11  ;;  %v120_v20 = vsub.s32 1, %v37_v11  ;;  %v21_v21 = vld [vmem:[%s883_s0 + $0x38] sm:$0x3f]  ;;  %v192_v25 = vsub.s32 2, %v37_v11  ;;  %v264_v33 = vsub.s32 3, %v37_v11 }
   0x6   :  { %91 = vperm.xlu1 %497, %v25_v3   ;;  %v336_v45 = vsub.s32 4, %v37_v11  ;;  %v408_v53 = vsub.s32 5, %v37_v11 }
   0x7   :  { %33 = vperm.xlu0 %496, %v23_v4   ;;  %v569_v22 = vrot.slane %v14_v13, %v38_v12  ;;  %v571_v23 = vrot.slane %v15_v14, %v38_v12  ;;  %v573_v24 = vrot.slane %v16_v15, %v38_v12  ;;  %v575_v26 = vrot.slane %v17_v16, %v38_v12 }
   0x8   :  { %v577_v27 = vrot.slane %v18_v17, %v38_v12  ;;  %v579_v28 = vrot.slane %v19_v18, %v38_v12  ;;  %v581_v29 = vrot.slane %v20_v19, %v38_v12  ;;  %v583_v30 = vrot.slane %v21_v21, %v38_v12 }
   0x9   :  { %v585_v31 = vrot.slane %v14_v13, %v120_v20  ;;  %v587_v32 = vrot.slane %v15_v14, %v120_v20  ;;  %v589_v34 = vrot.slane %v16_v15, %v120_v20  ;;  %v591_v35 = vrot.slane %v17_v16, %v120_v20 }
   0xa   :  { %499 = vset.pattern.permute.xlu1 %v508_v5  ;;  %v593_v36 = vrot.slane %v18_v17, %v120_v20  ;;  %v595_v37 = vrot.slane %v19_v18, %v120_v20  ;;  %v597_v38 = vrot.slane %v20_v19, %v120_v20  ;;  %v599_v39 = vrot.slane %v21_v21, %v120_v20 }
   0xb   :  { %498 = vset.pattern.permute.xlu0 %v508_v5  ;;  %115 = vperm.xlu1 %499, %v23_v4   ;;  %v601_v40 = vrot.slane %v14_v13, %v192_v25  ;;  %v603_v41 = vrot.slane %v15_v14, %v192_v25  ;;  %v605_v42 = vrot.slane %v16_v15, %v192_v25 }
   0xc   :  { %111 = vperm.xlu0 %498, %v22_v2   ;;  %v607_v43 = vrot.slane %v17_v16, %v192_v25  ;;  %v609_v44 = vrot.slane %v18_v17, %v192_v25  ;;  %v611_v46 = vrot.slane %v19_v18, %v192_v25  ;;  %v613_v47 = vrot.slane %v20_v19, %v192_v25 }
   0xd   :  { %v615_v48 = vrot.slane %v21_v21, %v192_v25  ;;  %v617_v49 = vrot.slane %v14_v13, %v264_v33  ;;  %v619_v50 = vrot.slane %v15_v14, %v264_v33  ;;  %v621_v51 = vrot.slane %v16_v15, %v264_v33 }
   0xe   :  { %v623_v52 = vrot.slane %v17_v16, %v264_v33  ;;  %v625_v54 = vrot.slane %v18_v17, %v264_v33  ;;  %v627_v55 = vrot.slane %v19_v18, %v264_v33  ;;  %v629_v56 = vrot.slane %v20_v19, %v264_v33 }
   0xf   :  { %500 = vset.pattern.permute.xlu1 %v509_v6  ;;  %v631_v57 = vrot.slane %v21_v21, %v264_v33  ;;  %v633_v58 = vrot.slane %v14_v13, %v336_v45  ;;  %v635_v59 = vrot.slane %v15_v14, %v336_v45  ;;  %v637_v60 = vrot.slane %v16_v15, %v336_v45 }
  0x10   :  { %501 = vset.pattern.permute.xlu0 %v509_v6  ;;  %183 = vperm.xlu1 %500, %v22_v2   ;;  %v639_v61 = vrot.slane %v17_v16, %v336_v45  ;;  %v641_v62 = vrot.slane %v18_v17, %v336_v45  ;;  %v643_v63 = vrot.slane %v19_v18, %v336_v45 }
  0x11   :  { %187 = vperm.xlu0 %501, %v23_v4   ;;  %900 = vst [vmem:[#allocation2_spill] sm:$0xff] %v635_v59  ;;  %901 = vst [vmem:[#allocation3_spill] sm:$0xff] %v637_v60  ;;  %v645_v0 = vrot.slane %v20_v19, %v336_v45  ;;  %v647_v1 = vrot.slane %v21_v21, %v336_v45  ;;  %v651_v5 = vrot.slane %v15_v14, %v408_v53 }
  0x12   :  { %902 = vst [vmem:[#allocation4_spill] sm:$0xff] %v639_v61  ;;  %903 = vst [vmem:[#allocation5_spill] sm:$0xff] %v641_v62  ;;  %v653_v6 = vrot.slane %v16_v15, %v408_v53  ;;  %v661_v12 = vrot.slane %v18_v17, %v408_v53  ;;  %v663_v20 = vrot.slane %v19_v18, %v408_v53 }
  0x13   :  { %904 = vst [vmem:[#allocation6_spill] sm:$0xff] %v643_v63  ;;  %905 = vst [vmem:[#allocation7_spill] sm:$0xff] %v645_v0  ;;  %v667_v14 = vrot.slane %v21_v21, %v408_v53 }
  0x14   :  { %502 = vset.pattern.permute.xlu1 %v510_v7  ;;  %906 = vst [vmem:[#allocation8_spill] sm:$0xff] %v647_v1  ;;  %908 = vst [vmem:[#allocation10_spill] sm:$0xff] %v651_v5  ;;  %v655_v7 = vrot.slane %v17_v16, %v408_v53 }
  0x15   :  { %503 = vset.pattern.permute.xlu0 %v511_v8  ;;  %255 = vperm.xlu1 %502, %v22_v2   ;;  %909 = vst [vmem:[#allocation11_spill] sm:$0xff] %v653_v6  ;;  %911 = vst [vmem:[#allocation13_spill] sm:$0xff] %v661_v12 }
  0x16   :  { %327 = vperm.xlu0 %503, %v22_v2   ;;  %910 = vst [vmem:[#allocation12_spill] sm:$0xff] %v655_v7  ;;  %912 = vst [vmem:[#allocation14_spill] sm:$0xff] %v663_v20 }
  0x17   :  { %914 = vst [vmem:[#allocation16_spill] sm:$0xff] %v667_v14 }
  0x19   :  { %259 = vperm.xlu1 %502, %v23_v4  }
  0x1a   :  { %506 = vset.pattern.permute.xlu0 %v512_v9 }
  0x1b   :  { %403 = vperm.xlu0 %506, %v23_v4  }
  0x1d   :  { %504 = vset.pattern.permute.xlu1 %v511_v8 }
  0x1e   :  { %331 = vperm.xlu1 %504, %v23_v4   ;;  %v649_v4 = vrot.slane %v14_v13, %v408_v53  ;;  %v665_v13 = vrot.slane %v20_v19, %v408_v53 }
  0x20   :  { %907 = vst [vmem:[#allocation9_spill] sm:$0xff] %v649_v4  ;;  %913 = vst [vmem:[#allocation15_spill] sm:$0xff] %v665_v13 }
  0x22   :  { %505 = vset.pattern.permute.xlu1 %v512_v9 }
  0x23   :  { %399 = vperm.xlu1 %505, %v22_v2  }
  0x7d   :  { %v87_v2 = vpop.permute.xlu1 %86 }
  0x7e   :  { %v29_v3 = vpop.permute.xlu0 %28 }
  0x7f   :  { %v68_v8 = vmul.f32 %v569_v22, %v29_v3  ;;  %v69_v9 = vmul.f32 %v571_v23, %v29_v3  ;;  %v70_v10 = vmul.f32 %v573_v24, %v29_v3  ;;  %v71_v11 = vmul.f32 %v575_v26, %v29_v3 }
  0x80   :  { %v72_v15 = vmul.f32 %v577_v27, %v29_v3  ;;  %v73_v16 = vmul.f32 %v579_v28, %v29_v3  ;;  %v74_v25 = vmul.f32 %v581_v29, %v29_v3  ;;  %v75_v33 = vmul.f32 %v583_v30, %v29_v3 }
  0x81   :  { %v94_v45 = vadd.f32 %v87_v2, %v68_v8  ;;  %v95_v7 = vadd.f32 %v87_v2, %v69_v9  ;;  %v96_v6 = vadd.f32 %v87_v2, %v70_v10  ;;  %v97_v5 = vadd.f32 %v87_v2, %v71_v11  ;;  %v92_v17 = vpop.permute.xlu1 %91 }
  0x82   :  { %v34_v12 = vpop.permute.xlu0 %33  ;;  %v98_v9 = vadd.f32 %v87_v2, %v72_v15  ;;  %v99_v10 = vadd.f32 %v87_v2, %v73_v16  ;;  %v100_v11 = vadd.f32 %v87_v2, %v74_v25  ;;  %v101_v20 = vadd.f32 %v87_v2, %v75_v33 }
  0x83   :  { %v76_v18 = vmul.f32 %v569_v22, %v34_v12  ;;  %v77_v19 = vmul.f32 %v571_v23, %v34_v12  ;;  %v78_v21 = vmul.f32 %v573_v24, %v34_v12  ;;  %v79_v53 = vmul.f32 %v575_v26, %v34_v12 }
  0x84   :  { %v80_v14 = vmul.f32 %v577_v27, %v34_v12  ;;  %v81_v13 = vmul.f32 %v579_v28, %v34_v12  ;;  %v82_v3 = vmul.f32 %v581_v29, %v34_v12  ;;  %v83_v8 = vmul.f32 %v583_v30, %v34_v12 }
  0x85   :  { %v102_v4 = vadd.f32 %v92_v17, %v76_v18  ;;  %v103_v22 = vadd.f32 %v92_v17, %v77_v19  ;;  %v104_v1 = vadd.f32 %v92_v17, %v78_v21  ;;  %v105_v23 = vadd.f32 %v92_v17, %v79_v53 }
  0x86   :  { %v106_v0 = vadd.f32 %v92_v17, %v80_v14  ;;  %v107_v24 = vadd.f32 %v92_v17, %v81_v13  ;;  %v108_v63 = vadd.f32 %v92_v17, %v82_v3  ;;  %v109_v26 = vadd.f32 %v92_v17, %v83_v8  ;;  %v116_v62 = vpop.permute.xlu1 %115 }
  0x87   :  { %v158_v27 = vmul.f32 %v585_v31, %v116_v62  ;;  %v159_v28 = vmul.f32 %v587_v32, %v116_v62  ;;  %v160_v29 = vmul.f32 %v589_v34, %v116_v62  ;;  %v161_v30 = vmul.f32 %v591_v35, %v116_v62  ;;  %v112_v13 = vpop.permute.xlu0 %111 }
  0x88   :  { %v162_v12 = vmul.f32 %v593_v36, %v116_v62  ;;  %v163_v2 = vmul.f32 %v595_v37, %v116_v62  ;;  %v164_v15 = vmul.f32 %v597_v38, %v116_v62  ;;  %v165_v14 = vmul.f32 %v599_v39, %v116_v62 }
  0x89   :  { %v174_v16 = vadd.f32 %v158_v27, %v102_v4  ;;  %v175_v25 = vadd.f32 %v159_v28, %v103_v22  ;;  %v176_v33 = vadd.f32 %v160_v29, %v104_v1  ;;  %v177_v17 = vadd.f32 %v161_v30, %v105_v23 }
  0x8a   :  { %v178_v18 = vadd.f32 %v162_v12, %v106_v0  ;;  %v179_v19 = vadd.f32 %v163_v2, %v107_v24  ;;  %v180_v21 = vadd.f32 %v164_v15, %v108_v63  ;;  %v181_v53 = vadd.f32 %v165_v14, %v109_v26 }
  0x8b   :  { %v150_v3 = vmul.f32 %v585_v31, %v112_v13  ;;  %v151_v8 = vmul.f32 %v587_v32, %v112_v13  ;;  %v152_v61 = vmul.f32 %v589_v34, %v112_v13  ;;  %v153_v60 = vmul.f32 %v591_v35, %v112_v13  ;;  %v184_v59 = vpop.permute.xlu1 %183 }
  0x8c   :  { %v154_v62 = vmul.f32 %v593_v36, %v112_v13  ;;  %v155_v4 = vmul.f32 %v595_v37, %v112_v13  ;;  %v156_v1 = vmul.f32 %v597_v38, %v112_v13  ;;  %v157_v0 = vmul.f32 %v599_v39, %v112_v13 }
  0x8d   :  { %v166_v22 = vadd.f32 %v150_v3, %v94_v45  ;;  %v167_v63 = vadd.f32 %v151_v8, %v95_v7  ;;  %v168_v23 = vadd.f32 %v152_v61, %v96_v6  ;;  %v169_v24 = vadd.f32 %v153_v60, %v97_v5  ;;  %v188_v61 = vpop.permute.xlu0 %187 }
  0x8e   :  { %v170_v31 = vadd.f32 %v154_v62, %v98_v9  ;;  %v171_v26 = vadd.f32 %v155_v4, %v99_v10  ;;  %v172_v32 = vadd.f32 %v156_v1, %v100_v11  ;;  %v173_v27 = vadd.f32 %v157_v0, %v101_v20 }
  0x8f   :  { %v222_v34 = vmul.f32 %v601_v40, %v184_v59  ;;  %v223_v35 = vmul.f32 %v603_v41, %v184_v59  ;;  %v224_v36 = vmul.f32 %v605_v42, %v184_v59  ;;  %v225_v37 = vmul.f32 %v607_v43, %v184_v59 }
  0x90   :  { %v226_v38 = vmul.f32 %v609_v44, %v184_v59  ;;  %v227_v39 = vmul.f32 %v611_v46, %v184_v59  ;;  %v228_v7 = vmul.f32 %v613_v47, %v184_v59  ;;  %v229_v60 = vmul.f32 %v615_v48, %v184_v59  ;;  %v256_v5 = vpop.permute.xlu1 %255 }
  0x91   :  { %v705_v6 = vadd.f32 %v222_v34, %v166_v22  ;;  %v707_v20 = vadd.f32 %v223_v35, %v167_v63  ;;  %v709_v45 = vadd.f32 %v224_v36, %v168_v23  ;;  %v711_v9 = vadd.f32 %v225_v37, %v169_v24  ;;  %v917_v23 = vld [vmem:[#allocation4_spill] sm:$0xff]  ;;  %v923_v34 = vld [vmem:[#allocation7_spill] sm:$0xff] }
  0x92   :  { %v713_v10 = vadd.f32 %v226_v38, %v170_v31  ;;  %v715_v11 = vadd.f32 %v227_v39, %v171_v26  ;;  %v717_v28 = vadd.f32 %v228_v7, %v172_v32  ;;  %v719_v29 = vadd.f32 %v229_v60, %v173_v27  ;;  %v919_v31 = vld [vmem:[#allocation5_spill] sm:$0xff]  ;;  %v921_v32 = vld [vmem:[#allocation6_spill] sm:$0xff]  ;;  %v925_v36 = vld [vmem:[#allocation8_spill] sm:$0xff] }
  0x93   :  { %v230_v59 = vmul.f32 %v601_v40, %v188_v61  ;;  %v231_v30 = vmul.f32 %v603_v41, %v188_v61  ;;  %v232_v12 = vmul.f32 %v605_v42, %v188_v61  ;;  %v233_v2 = vmul.f32 %v607_v43, %v188_v61  ;;  %v328_v42 = vpop.permute.xlu0 %327 }
  0x94   :  { %v234_v15 = vmul.f32 %v609_v44, %v188_v61  ;;  %v235_v14 = vmul.f32 %v611_v46, %v188_v61  ;;  %v236_v13 = vmul.f32 %v613_v47, %v188_v61  ;;  %v237_v3 = vmul.f32 %v615_v48, %v188_v61  ;;  %v260_v8 = vpop.permute.xlu1 %259 }
  0x95   :  { %v246_v62 = vadd.f32 %v230_v59, %v174_v16  ;;  %v247_v4 = vadd.f32 %v231_v30, %v175_v25  ;;  %v248_v1 = vadd.f32 %v232_v12, %v176_v33  ;;  %v249_v0 = vadd.f32 %v233_v2, %v177_v17 }
  0x96   :  { %v250_v40 = vadd.f32 %v234_v15, %v178_v18  ;;  %v251_v22 = vadd.f32 %v235_v14, %v179_v19  ;;  %v252_v41 = vadd.f32 %v236_v13, %v180_v21  ;;  %v253_v63 = vadd.f32 %v237_v3, %v181_v53  ;;  %v915_v18 = vld [vmem:[#allocation2_spill] sm:$0xff]  ;;  %v916_v21 = vld [vmem:[#allocation3_spill] sm:$0xff] }
  0x97   :  { %v730_v43 = vmul.f32 %v617_v49, %v256_v5  ;;  %v733_v44 = vmul.f32 %v619_v50, %v256_v5  ;;  %v736_v46 = vmul.f32 %v621_v51, %v256_v5  ;;  %v739_v47 = vmul.f32 %v623_v52, %v256_v5  ;;  %v404_v3 = vpop.permute.xlu0 %403 }
  0x98   :  { %v742_v48 = vmul.f32 %v625_v54, %v256_v5  ;;  %v745_v16 = vmul.f32 %v627_v55, %v256_v5  ;;  %v748_v25 = vmul.f32 %v629_v56, %v256_v5  ;;  %v751_v33 = vmul.f32 %v631_v57, %v256_v5 }
  0x99   :  { %v754_v17 = vmul.f32 %v633_v58, %v328_v42  ;;  %v757_v19 = vmul.f32 %v915_v18, %v328_v42  ;;  %v760_v53 = vmul.f32 %v916_v21, %v328_v42  ;;  %v763_v24 = vmul.f32 %v917_v23, %v328_v42  ;;  %v332_v38 = vpop.permute.xlu1 %331 }
  0x9a   :  { %v766_v26 = vmul.f32 %v919_v31, %v328_v42  ;;  %v769_v27 = vmul.f32 %v921_v32, %v328_v42  ;;  %v772_v35 = vmul.f32 %v923_v34, %v328_v42  ;;  %v775_v37 = vmul.f32 %v925_v36, %v328_v42 }
  0x9b   :  { %918 = vst [vmem:[#allocation2_spill] sm:$0xff] %v763_v24  ;;  %v302_v39 = vmul.f32 %v617_v49, %v260_v8  ;;  %v303_v7 = vmul.f32 %v619_v50, %v260_v8  ;;  %v304_v60 = vmul.f32 %v621_v51, %v260_v8  ;;  %v305_v61 = vmul.f32 %v623_v52, %v260_v8 }
  0x9c   :  { %920 = vst [vmem:[#allocation3_spill] sm:$0xff] %v766_v26  ;;  %922 = vst [vmem:[#allocation4_spill] sm:$0xff] %v769_v27  ;;  %v306_v5 = vmul.f32 %v625_v54, %v260_v8  ;;  %v307_v59 = vmul.f32 %v627_v55, %v260_v8  ;;  %v308_v30 = vmul.f32 %v629_v56, %v260_v8 }
  0x9d   :  { %924 = vst [vmem:[#allocation5_spill] sm:$0xff] %v772_v35  ;;  %926 = vst [vmem:[#allocation6_spill] sm:$0xff] %v775_v37  ;;  %v309_v12 = vmul.f32 %v631_v57, %v260_v8  ;;  %v374_v2 = vmul.f32 %v633_v58, %v332_v38  ;;  %v375_v15 = vmul.f32 %v915_v18, %v332_v38 }
  0x9e   :  { %v376_v49 = vmul.f32 %v916_v21, %v332_v38  ;;  %v377_v50 = vmul.f32 %v917_v23, %v332_v38  ;;  %v378_v51 = vmul.f32 %v919_v31, %v332_v38  ;;  %v379_v52 = vmul.f32 %v921_v32, %v332_v38 }
  0x9f   :  { %v380_v54 = vmul.f32 %v923_v34, %v332_v38  ;;  %v381_v55 = vmul.f32 %v925_v36, %v332_v38  ;;  %v318_v14 = vadd.f32 %v302_v39, %v246_v62  ;;  %v319_v56 = vadd.f32 %v303_v7, %v247_v4  ;;  %v927_v34 = vld [vmem:[#allocation9_spill] sm:$0xff]  ;;  %v928_v36 = vld [vmem:[#allocation10_spill] sm:$0xff]  ;;  %v929_v4 = vld [vmem:[#allocation11_spill] sm:$0xff] }
  0xa0   :  { %v320_v13 = vadd.f32 %v304_v60, %v248_v1  ;;  %v321_v57 = vadd.f32 %v305_v61, %v249_v0  ;;  %v322_v58 = vadd.f32 %v306_v5, %v250_v40  ;;  %v323_v8 = vadd.f32 %v307_v59, %v251_v22  ;;  %v930_v0 = vld [vmem:[#allocation12_spill] sm:$0xff]  ;;  %v931_v40 = vld [vmem:[#allocation13_spill] sm:$0xff]  ;;  %v933_v39 = vld [vmem:[#allocation15_spill] sm:$0xff] }
  0xa1   :  { %v324_v42 = vadd.f32 %v308_v30, %v252_v41  ;;  %v325_v18 = vadd.f32 %v309_v12, %v253_v63  ;;  %v390_v21 = vadd.f32 %v374_v2, %v318_v14  ;;  %v391_v37 = vadd.f32 %v375_v15, %v319_v56  ;;  %v932_v41 = vld [vmem:[#allocation14_spill] sm:$0xff]  ;;  %v934_v60 = vld [vmem:[#allocation16_spill] sm:$0xff] }
  0xa2   :  { %v392_v23 = vadd.f32 %v376_v49, %v320_v13  ;;  %v393_v35 = vadd.f32 %v377_v50, %v321_v57  ;;  %v394_v31 = vadd.f32 %v378_v51, %v322_v58  ;;  %v395_v27 = vadd.f32 %v379_v52, %v323_v8 }
  0xa3   :  { %v396_v32 = vadd.f32 %v380_v54, %v324_v42  ;;  %v397_v26 = vadd.f32 %v381_v55, %v325_v18  ;;  %v446_v24 = vmul.f32 %v927_v34, %v404_v3  ;;  %v447_v62 = vmul.f32 %v928_v36, %v404_v3  ;;  %v936_v52 = vld [vmem:[#allocation3_spill] sm:$0xff] }
  0xa4   :  { %v448_v1 = vmul.f32 %v929_v4, %v404_v3  ;;  %v449_v38 = vmul.f32 %v930_v0, %v404_v3  ;;  %v450_v22 = vmul.f32 %v931_v40, %v404_v3  ;;  %v451_v63 = vmul.f32 %v932_v41, %v404_v3  ;;  %v938_v55 = vld [vmem:[#allocation5_spill] sm:$0xff] }
  0xa5   :  { %v452_v7 = vmul.f32 %v933_v39, %v404_v3  ;;  %v453_v61 = vmul.f32 %v934_v60, %v404_v3  ;;  %v462_v5 = vadd.f32 %v446_v24, %v390_v21  ;;  %v463_v59 = vadd.f32 %v447_v62, %v391_v37  ;;  %v935_v37 = vld [vmem:[#allocation2_spill] sm:$0xff] }
  0xa6   :  { %v464_v30 = vadd.f32 %v448_v1, %v392_v23  ;;  %v465_v12 = vadd.f32 %v449_v38, %v393_v35  ;;  %v466_v2 = vadd.f32 %v450_v22, %v394_v31  ;;  %v467_v15 = vadd.f32 %v451_v63, %v395_v27 }
  0xa7   :  { %v468_v49 = vadd.f32 %v452_v7, %v396_v32  ;;  %v469_v50 = vadd.f32 %v453_v61, %v397_v26  ;;  %478 = vst [vmem:[%s884_s3 + $0x40] sm:$0xff] %v462_v5  ;;  %479 = vst [vmem:[%s884_s3 + $0x48] sm:$0xff] %v463_v59  ;;  %v310_v24 = vadd.f32 %v730_v43, %v705_v6  ;;  %v400_v6 = vpop.permute.xlu1 %399 }
  0xa8   :  { %480 = vst [vmem:[%s884_s3 + $0x50] sm:$0xff] %v464_v30  ;;  %481 = vst [vmem:[%s884_s3 + $0x58] sm:$0xff] %v465_v12  ;;  %v311_v26 = vadd.f32 %v733_v44, %v707_v20  ;;  %v312_v27 = vadd.f32 %v736_v46, %v709_v45  ;;  %v313_v35 = vadd.f32 %v739_v47, %v711_v9 }
  0xa9   :  { %482 = vst [vmem:[%s884_s3 + $0x60] sm:$0xff] %v466_v2  ;;  %483 = vst [vmem:[%s884_s3 + $0x68] sm:$0xff] %v467_v15  ;;  %v314_v20 = vadd.f32 %v742_v48, %v713_v10  ;;  %v315_v45 = vadd.f32 %v745_v16, %v715_v11  ;;  %v316_v9 = vadd.f32 %v748_v25, %v717_v28  ;;  %v937_v10 = vld [vmem:[#allocation4_spill] sm:$0xff]  ;;  %v939_v16 = vld [vmem:[#allocation6_spill] sm:$0xff] }
  0xaa   :  { %484 = vst [vmem:[%s884_s3 + $0x70] sm:$0xff] %v468_v49  ;;  %485 = vst [vmem:[%s884_s3 + $0x78] sm:$0xff] %v469_v50  ;;  %v317_v43 = vadd.f32 %v751_v33, %v719_v29  ;;  %v382_v44 = vadd.f32 %v754_v17, %v310_v24  ;;  %v383_v46 = vadd.f32 %v757_v19, %v311_v26 }
  0xab   :  { %v384_v47 = vadd.f32 %v760_v53, %v312_v27  ;;  %v385_v51 = vadd.f32 %v935_v37, %v313_v35  ;;  %v386_v54 = vadd.f32 %v936_v52, %v314_v20  ;;  %v387_v48 = vadd.f32 %v937_v10, %v315_v45 }
  0xac   :  { %v388_v11 = vadd.f32 %v938_v55, %v316_v9  ;;  %v389_v14 = vadd.f32 %v939_v16, %v317_v43  ;;  %v438_v28 = vmul.f32 %v927_v34, %v400_v6  ;;  %v439_v29 = vmul.f32 %v928_v36, %v400_v6 }
  0xad   :  { %v440_v25 = vmul.f32 %v929_v4, %v400_v6  ;;  %v441_v33 = vmul.f32 %v930_v0, %v400_v6  ;;  %v442_v17 = vmul.f32 %v931_v40, %v400_v6  ;;  %v443_v19 = vmul.f32 %v932_v41, %v400_v6 }
  0xae   :  { %v444_v53 = vmul.f32 %v933_v39, %v400_v6  ;;  %v445_v56 = vmul.f32 %v934_v60, %v400_v6  ;;  %v454_v13 = vadd.f32 %v438_v28, %v382_v44  ;;  %v455_v57 = vadd.f32 %v439_v29, %v383_v46 }
  0xaf   :  { %v456_v3 = vadd.f32 %v440_v25, %v384_v47  ;;  %v457_v58 = vadd.f32 %v441_v33, %v385_v51  ;;  %v458_v8 = vadd.f32 %v442_v17, %v386_v54  ;;  %v459_v42 = vadd.f32 %v443_v19, %v387_v48 }
  0xb0   :  { %v460_v18 = vadd.f32 %v444_v53, %v388_v11  ;;  %v461_v21 = vadd.f32 %v445_v56, %v389_v14  ;;  %470 = vst [vmem:[%s884_s3] sm:$0xff] %v454_v13  ;;  %471 = vst [vmem:[%s884_s3 + $0x8] sm:$0xff] %v455_v57 }
  0xb1   :  { %472 = vst [vmem:[%s884_s3 + $0x10] sm:$0xff] %v456_v3  ;;  %473 = vst [vmem:[%s884_s3 + $0x18] sm:$0xff] %v457_v58 }
  0xb2   :  { %474 = vst [vmem:[%s884_s3 + $0x20] sm:$0xff] %v458_v8  ;;  %475 = vst [vmem:[%s884_s3 + $0x28] sm:$0xff] %v459_v42 }
  0xb3   :  { %476 = vst [vmem:[%s884_s3 + $0x30] sm:$0xff] %v460_v18  ;;  %477 = vst [vmem:[%s884_s3 + $0x38] sm:$0xff] %v461_v21 }

</bundles_post_ra>
